<compile_context>
chip_gen: v7x
topology: tpu7x:2x2x1
jax: 0.10.0
libtpu: 0.0.40
codegen_flags: <defaults>
</compile_context>

<pallas_src>
import functools

import jax
import jax.numpy as jnp
from jax import lax
from jax.experimental import pallas as pl
from jax.experimental.pallas import tpu as pltpu


def _pad128(n):
    return ((n + 127) // 128) * 128


def supcon_kernel(x_ref, wf_ref, bf_ref, g_ref, beta_ref, w2_ref, b2_ref,
                  slab_ref, zpad_ref, *, dim_in):
    """x: (B, dim_in) f32.
    wf: (dim_in, N1) bf16 = [W1.T | Wc.T | 0-pad], bf: (1, N1) f32 fused bias.
    w2: (dim_in, N2) bf16 = [W2.T | 0-pad],        b2: (1, N2) f32.
    slab_ref: (B, N1) f32 — cols [0:dim_in] = projection pre-act, cols [dim_in:dim_in+nc] = y.
    zpad_ref: (B, N2) f32 — cols [0:feat_dim] = normalized z (pad cols are exactly 0).
    """
    x_bf = x_ref[...].astype(jnp.bfloat16)

    # ---- fused matmul: cls logits + first projection Linear (one lane-dense MXU pass)
    slab = jnp.dot(x_bf, wf_ref[...], preferred_element_type=jnp.float32) + bf_ref[...]
    slab_ref[...] = slab                                   # lane-dense (B, N1) store

    # ---- projection path -------------------------------------------------
    h = slab[:, :dim_in]                                   # lane-aligned static slice

    # BatchNorm1d (training mode: batch stats, biased variance, eps=1e-5)
    mean = jnp.mean(h, axis=0, keepdims=True)
    c = h - mean
    var = jnp.mean(c * c, axis=0, keepdims=True)
    h_bn = c * lax.rsqrt(var + 1e-5) * g_ref[...] + beta_ref[...]

    # CELU(alpha=1): x>0 ? x : exp(x)-1   (select, so exp branch cannot poison)
    a = jnp.where(h_bn > 0, h_bn, jnp.exp(h_bn) - 1.0)

    # Linear(dim_in, feat_dim) into the padded (zero-column) weight slab
    z = jnp.dot(a.astype(jnp.bfloat16), w2_ref[...],
                preferred_element_type=jnp.float32) + b2_ref[...]

    # F.normalize(z, dim=1): z / max(||z||_2, 1e-12)  ==  z * rsqrt(max(sumsq, 1e-24)).
    # Padded columns are exactly zero so they contribute nothing to sumsq.
    sumsq = jnp.sum(z * z, axis=1, keepdims=True)
    inv = lax.rsqrt(jnp.maximum(sumsq, 1e-24))
    zpad_ref[...] = z * inv


def prepare_params(params):
    """One-time host-side weight prep: transpose, fuse, pad to 128 lanes, cast to bf16."""
    dim_in = params["w1"].shape[0]
    num_classes = params["wc"].shape[0]
    feat_dim = params["w2"].shape[0]
    n1 = _pad128(dim_in + num_classes)
    n2 = _pad128(feat_dim)

    wf = jnp.concatenate([params["w1"].T, params["wc"].T], axis=1)      # (dim_in, dim_in+nc)
    wf = jnp.pad(wf, ((0, 0), (0, n1 - (dim_in + num_classes))))
    bf = jnp.concatenate([params["b1"], params["bc"]], axis=1)          # (1, dim_in+nc)
    bf = jnp.pad(bf, ((0, 0), (0, n1 - (dim_in + num_classes))))

    w2t = jnp.pad(params["w2"].T, ((0, 0), (0, n2 - feat_dim)))         # (dim_in, N2)
    b2 = jnp.pad(params["b2"], ((0, 0), (0, n2 - feat_dim)))            # (1, N2)

    return {
        "wf": wf.astype(jnp.bfloat16),
        "bf": bf.astype(jnp.float32),
        "gamma": params["gamma"].astype(jnp.float32),
        "beta": params["beta"].astype(jnp.float32),
        "w2t": w2t.astype(jnp.bfloat16),
        "b2": b2.astype(jnp.float32),
        "dims": (dim_in, num_classes, feat_dim),
    }


def supcon_forward(x, prepped):
    """x: (B, dim_in) f32; prepped: output of prepare_params. Returns [y, z]."""
    dim_in, num_classes, feat_dim = prepped["dims"]
    B = x.shape[0]
    n1 = prepped["wf"].shape[1]
    n2 = prepped["w2t"].shape[1]

    def full_spec(shape):
        return pl.BlockSpec(shape, lambda: (0,) * len(shape))

    args = (x, prepped["wf"], prepped["bf"], prepped["gamma"], prepped["beta"],
            prepped["w2t"], prepped["b2"])

    slab, z_pad = pl.pallas_call(
        functools.partial(supcon_kernel, dim_in=dim_in),
        out_shape=(
            jax.ShapeDtypeStruct((B, n1), jnp.float32),
            jax.ShapeDtypeStruct((B, n2), jnp.float32),
        ),
        grid=(),
        in_specs=[full_spec(a.shape) for a in args],
        out_specs=(full_spec((B, n1)), full_spec((B, n2))),
        compiler_params=pltpu.CompilerParams(vmem_limit_bytes=32 << 20),
    )(*args)

    y = slab[:, dim_in:dim_in + num_classes]   # wrapper-side slice: pure layout plumbing
    z = z_pad[:, :feat_dim]
    return [y, z]


def init_params(key, dim_in, num_classes, feat_dim):
    """PyTorch-style (out_features, in_features) weights, nn.Linear default init."""
    ks = jax.random.split(key, 6)
    scale = 1.0 / jnp.sqrt(dim_in)
    return {
        "wc": jax.random.uniform(ks[0], (num_classes, dim_in), jnp.float32, -scale, scale),
        "bc": jax.random.uniform(ks[1], (1, num_classes), jnp.float32, -scale, scale),
        "w1": jax.random.uniform(ks[2], (dim_in, dim_in), jnp.float32, -scale, scale),
        "b1": jax.random.uniform(ks[3], (1, dim_in), jnp.float32, -scale, scale),
        "gamma": jnp.ones((1, dim_in), jnp.float32),   # BatchNorm1d defaults
        "beta": jnp.zeros((1, dim_in), jnp.float32),
        "w2": jax.random.uniform(ks[4], (feat_dim, dim_in), jnp.float32, -scale, scale),
        "b2": jax.random.uniform(ks[5], (1, feat_dim), jnp.float32, -scale, scale),
    }


def reference_forward(x, p, bf16_matmuls):
    """Pure-JAX reference. bf16_matmuls=True mirrors the kernel's precision exactly;
    False is the original f32 PyTorch semantics."""
    dt = jnp.bfloat16 if bf16_matmuls else jnp.float32

    def mm(a, w):  # w is PyTorch-style (out, in)
        return jnp.dot(a.astype(dt), w.T.astype(dt), preferred_element_type=jnp.float32)

    y = mm(x, p["wc"]) + p["bc"]
    h = mm(x, p["w1"]) + p["b1"]
    mean = jnp.mean(h, axis=0, keepdims=True)
    var = jnp.mean((h - mean) ** 2, axis=0, keepdims=True)
    h = (h - mean) * lax.rsqrt(var + 1e-5) * p["gamma"] + p["beta"]
    a = jnp.where(h > 0, h, jnp.exp(h) - 1.0)
    z = mm(a, p["w2"]) + p["b2"]
    z = z / jnp.maximum(jnp.linalg.norm(z, axis=1, keepdims=True), 1e-12)
    return [y, z]


if __name__ == "__main__":
    # Small shapes consistent with the module: dataset='MNIST', depth=18 -> dim_in=64.
    B, dim_in, num_classes, feat_dim = 8, 64, 16, 32

    key = jax.random.PRNGKey(0)
    kx, kp = jax.random.split(key)
    x = jax.random.normal(kx, (B, dim_in), dtype=jnp.float32)
    params = init_params(kp, dim_in, num_classes, feat_dim)
    prepped = prepare_params(params)

    y, z = supcon_forward(x, prepped)
    jax.block_until_ready((y, z))

    assert y.shape == (B, num_classes) and z.shape == (B, feat_dim)

    # Tight check against a reference with identical (bf16-weight, f32-accum) semantics.
    y_ref, z_ref = reference_forward(x, params, bf16_matmuls=True)
    assert jnp.allclose(y, y_ref, atol=2e-3, rtol=2e-3)
    assert jnp.allclose(z, z_ref, atol=2e-3, rtol=2e-3)

    # Loose check against the full-f32 PyTorch semantics (intentional bf16 weight trade).
    y32, z32 = reference_forward(x, params, bf16_matmuls=False)
    assert jnp.allclose(y, y32, atol=1e-1, rtol=1e-1)
    assert jnp.allclose(z, z32, atol=1e-1, rtol=1e-1)

    print("KERNEL_OK")
</pallas_src>

<mosaic_0001>
module attributes {stable_mosaic.version = 11 : i64} {
  func.func @supcon_kernel(%arg0: memref<8x64xf32, #tpu.memory_space<vmem>>, %arg1: memref<64x128xbf16, #tpu.memory_space<vmem>>, %arg2: memref<1x128xf32, #tpu.memory_space<vmem>>, %arg3: memref<1x64xf32, #tpu.memory_space<vmem>>, %arg4: memref<1x64xf32, #tpu.memory_space<vmem>>, %arg5: memref<64x128xbf16, #tpu.memory_space<vmem>>, %arg6: memref<1x128xf32, #tpu.memory_space<vmem>>, %arg7: memref<8x128xf32, #tpu.memory_space<vmem>>, %arg8: memref<8x128xf32, #tpu.memory_space<vmem>>) attributes {dimension_semantics = [], scalar_prefetch = 0 : i64, scratch_operands = 0 : i64, tpu.core_type = #tpu.core_type<tc>} {
    %c0 = arith.constant 0 : index
    %c0_0 = arith.constant 0 : index
    %0 = vector.load %arg0[%c0, %c0_0] : memref<8x64xf32, #tpu.memory_space<vmem>>, vector<8x64xf32>
    %1 = arith.truncf %0 : vector<8x64xf32> to vector<8x64xbf16>
    %c0_1 = arith.constant 0 : index
    %c0_2 = arith.constant 0 : index
    %2 = vector.load %arg1[%c0_1, %c0_2] : memref<64x128xbf16, #tpu.memory_space<vmem>>, vector<64x128xbf16>
    %cst = arith.constant dense<0.000000e+00> : vector<8x128xf32>
    %3 = tpu.matmul %1, %2, %cst {dimension_numbers = #tpu.dot_dimension_numbers<[1], [0], [0], [1], [0, 0, 1, 1], [], []>} : vector<8x64xbf16>, vector<64x128xbf16>, vector<8x128xf32> -> vector<8x128xf32>
    %c0_3 = arith.constant 0 : index
    %c0_4 = arith.constant 0 : index
    %4 = vector.load %arg2[%c0_3, %c0_4] : memref<1x128xf32, #tpu.memory_space<vmem>>, vector<1x128xf32>
    %5 = vector.broadcast %4 : vector<1x128xf32> to vector<8x128xf32>
    %6 = arith.addf %3, %5 : vector<8x128xf32>
    %c0_5 = arith.constant 0 : index
    %c0_6 = arith.constant 0 : index
    %7 = vector.load %arg7[%c0_5, %c0_6] : memref<8x128xf32, #tpu.memory_space<vmem>>, vector<8x128xf32>
    tpu.vector_store %arg7[%c0_5, %c0_6], %6 {strides = array<i32>} : memref<8x128xf32, #tpu.memory_space<vmem>>, vector<8x128xf32>,
    %8 = vector.extract_strided_slice %6 {offsets = [0, 0], sizes = [8, 64], strides = [1, 1]} : vector<8x128xf32> to vector<8x64xf32>
    %cst_7 = arith.constant dense<0.000000e+00> : vector<64xf32>
    %9 = vector.multi_reduction <add>, %8, %cst_7 [0] : vector<8x64xf32> to vector<64xf32>
    %10 = vector.shape_cast %9 : vector<64xf32> to vector<1x64xf32>
    %cst_8 = arith.constant 8.000000e+00 : f32
    %11 = vector.broadcast %cst_8 : f32 to vector<1x64xf32>
    %12 = arith.divf %10, %11 : vector<1x64xf32>
    %13 = vector.broadcast %12 : vector<1x64xf32> to vector<8x64xf32>
    %14 = arith.subf %8, %13 : vector<8x64xf32>
    %15 = arith.mulf %14, %14 : vector<8x64xf32>
    %cst_9 = arith.constant dense<0.000000e+00> : vector<64xf32>
    %16 = vector.multi_reduction <add>, %15, %cst_9 [0] : vector<8x64xf32> to vector<64xf32>
    %17 = vector.shape_cast %16 : vector<64xf32> to vector<1x64xf32>
    %cst_10 = arith.constant 8.000000e+00 : f32
    %18 = vector.broadcast %cst_10 : f32 to vector<1x64xf32>
    %19 = arith.divf %17, %18 : vector<1x64xf32>
    %cst_11 = arith.constant 9.99999974E-6 : f32
    %20 = vector.broadcast %cst_11 : f32 to vector<1x64xf32>
    %21 = arith.addf %19, %20 : vector<1x64xf32>
    %22 = math.rsqrt %21 : vector<1x64xf32>
    %23 = vector.broadcast %22 : vector<1x64xf32> to vector<8x64xf32>
    %24 = arith.mulf %14, %23 : vector<8x64xf32>
    %c0_12 = arith.constant 0 : index
    %c0_13 = arith.constant 0 : index
    %25 = vector.load %arg3[%c0_12, %c0_13] : memref<1x64xf32, #tpu.memory_space<vmem>>, vector<1x64xf32>
    %26 = vector.broadcast %25 : vector<1x64xf32> to vector<8x64xf32>
    %27 = arith.mulf %24, %26 : vector<8x64xf32>
    %c0_14 = arith.constant 0 : index
    %c0_15 = arith.constant 0 : index
    %28 = vector.load %arg4[%c0_14, %c0_15] : memref<1x64xf32, #tpu.memory_space<vmem>>, vector<1x64xf32>
    %29 = vector.broadcast %28 : vector<1x64xf32> to vector<8x64xf32>
    %30 = arith.addf %27, %29 : vector<8x64xf32>
    %cst_16 = arith.constant 0.000000e+00 : f32
    %31 = vector.broadcast %cst_16 : f32 to vector<8x64xf32>
    %32 = arith.cmpf ogt, %30, %31 : vector<8x64xf32>
    %33 = math.exp %30 : vector<8x64xf32>
    %cst_17 = arith.constant 1.000000e+00 : f32
    %34 = vector.broadcast %cst_17 : f32 to vector<8x64xf32>
    %35 = arith.subf %33, %34 : vector<8x64xf32>
    %36 = arith.select %32, %30, %35 : vector<8x64xi1>, vector<8x64xf32>
    %37 = arith.truncf %36 : vector<8x64xf32> to vector<8x64xbf16>
    %c0_18 = arith.constant 0 : index
    %c0_19 = arith.constant 0 : index
    %38 = vector.load %arg5[%c0_18, %c0_19] : memref<64x128xbf16, #tpu.memory_space<vmem>>, vector<64x128xbf16>
    %cst_20 = arith.constant dense<0.000000e+00> : vector<8x128xf32>
    %39 = tpu.matmul %37, %38, %cst_20 {dimension_numbers = #tpu.dot_dimension_numbers<[1], [0], [0], [1], [0, 0, 1, 1], [], []>} : vector<8x64xbf16>, vector<64x128xbf16>, vector<8x128xf32> -> vector<8x128xf32>
    %c0_21 = arith.constant 0 : index
    %c0_22 = arith.constant 0 : index
    %40 = vector.load %arg6[%c0_21, %c0_22] : memref<1x128xf32, #tpu.memory_space<vmem>>, vector<1x128xf32>
    %41 = vector.broadcast %40 : vector<1x128xf32> to vector<8x128xf32>
    %42 = arith.addf %39, %41 : vector<8x128xf32>
    %43 = arith.mulf %42, %42 : vector<8x128xf32>
    %cst_23 = arith.constant dense<0.000000e+00> : vector<8xf32>
    %44 = vector.multi_reduction <add>, %43, %cst_23 [1] : vector<8x128xf32> to vector<8xf32>
    %45 = vector.shape_cast %44 : vector<8xf32> to vector<8x1xf32>
    %cst_24 = arith.constant 1.000000e-24 : f32
    %46 = vector.broadcast %cst_24 : f32 to vector<8x1xf32>
    %47 = arith.maximumf %45, %46 : vector<8x1xf32>
    %48 = math.rsqrt %47 : vector<8x1xf32>
    %49 = vector.broadcast %48 : vector<8x1xf32> to vector<8x128xf32>
    %50 = arith.mulf %42, %49 : vector<8x128xf32>
    %c0_25 = arith.constant 0 : index
    %c0_26 = arith.constant 0 : index
    %51 = vector.load %arg8[%c0_25, %c0_26] : memref<8x128xf32, #tpu.memory_space<vmem>>, vector<8x128xf32>
    tpu.vector_store %arg8[%c0_25, %c0_26], %50 {strides = array<i32>} : memref<8x128xf32, #tpu.memory_space<vmem>>, vector<8x128xf32>,
    return
  }
}

</mosaic_0001>

<bundles_post_ra>
// kernel: tpu_custom_call.1
= control target key start
LH: loop header
LB: loop body
LE: loop exit
PB: predicated region body
PF: predicated region fallthrough
CT: control target
= control target key end

     0   :  { %14 = vsyncpa [#allocation3], 0  ;;  %s645_s0 = inlined_call_operand.hbm [shape: f32[8,64], index: 0, kind: input, shape index: {}]   ;;  %s646_s1 = inlined_call_operand.hbm [shape: bf16[64,128], index: 1, kind: input, shape index: {}]   ;;  %s647_s2 = inlined_call_operand.vmem [shape: f32[1,128], index: 2, kind: input, shape index: {}]   ;;  %s648_s3 = inlined_call_operand.vmem [shape: f32[1,64], index: 3, kind: input, shape index: {}]   ;;  %s649_s4 = inlined_call_operand.vmem [shape: f32[1,64], index: 4, kind: input, shape index: {}]   ;;  %s650_s5 = inlined_call_operand.hbm [shape: bf16[64,128], index: 5, kind: input, shape index: {}]   ;;  %s651_s6 = inlined_call_operand.vmem [shape: f32[1,128], index: 6, kind: input, shape index: {}]   ;;  %s652_s7 = inlined_call_operand.hbm [shape: f32[8,128], index: 7, kind: output, shape index: {0}]   ;;  %s653_s8 = inlined_call_operand.hbm [shape: f32[8,128], index: 8, kind: output, shape index: {1}]  }
   0x1   :  { %15 = vsyncpa [#allocation6], 0 }
   0x2   :  { %16 = vsyncpa [#allocation4], 0 }
   0x3   :  { %17 = vsyncpa [#allocation10], 0  ;;  %s509_s27 = smov [#allocation5]   ;;  %s391_s9 = scalar_lea.hbm %s646_s1, 512 }
   0x4   :  { %s33_s28 = sshll.u32 %s509_s27, 4  ;;  %p392_p0 = scmp.ne.s32.totalorder %s646_s1, %s391_s9  ;;  %s34_s28 = int_to_ptr.vmem [resolvable:$true] %s33_s28 }
   0x5   :  { %p395_p1 = scmp.lt.u32.totalorder %s391_s9, %s646_s1 }
   0x7   :  { %p397_p2 = pnand %p395_p1, %p392_p0 }
   0x9   :  { %400 = shalt.err (!%p397_p2)
}
   0xa   :  { %s401_s14 = scalar_lea.vmem %s34_s28, 512  ;;  %p406_p4 = scmp.lt.s32.totalorder %s34_s28, %s34_s28 }
   0xb   :  { %p402_p3 = scmp.ne.s32.totalorder %s34_s28, %s401_s14  ;;  %p407_p5 = scmp.lt.s32.totalorder %s401_s14, %s401_s14 }
   0xd   :  { %p408_p6 = por %p407_p5, %p406_p4 }
   0xf   :  { %p409_p7 = pnand %p408_p6, %p402_p3 }
  0x11   :  { %412 = shalt.err (!%p409_p7)
}
  0x12   :  { %s510_s15 = smov 64   ;;  %s511_s16 = smov 4  }
  0x13   :  { %39 = dma.hbm_to_vmem [thread:$0]  %s646_s1, 512, %s34_s28, [#allocation6], %s510_s15, %s510_s15, %s511_s16  }
  0x14   :  { %s512_s19 = smov [#allocation2]   ;;  %s513_s21 = smov [#allocation7]  }
  0x15   :  { %s24_s20 = sshll.u32 %s512_s19, 4  ;;  %s51_s22 = sshll.u32 %s513_s21, 4  ;;  %s25_s20 = int_to_ptr.vmem [resolvable:$true] %s24_s20  ;;  %s52_s22 = int_to_ptr.vmem [resolvable:$true] %s51_s22 }
  0x16   :  { %s413_s25 = scalar_lea.hbm %s645_s0, 128 }
  0x17   :  { %p414_p8 = scmp.ne.s32.totalorder %s645_s0, %s413_s25  ;;  %p417_p9 = scmp.lt.u32.totalorder %s413_s25, %s645_s0 }
  0x19   :  { %p419_p10 = pnand %p417_p9, %p414_p8 }
  0x1b   :  { %422 = shalt.err (!%p419_p10)
}
  0x1c   :  { %s423_s1 = scalar_lea.vmem %s25_s20, 128  ;;  %p428_p12 = scmp.lt.s32.totalorder %s25_s20, %s25_s20 }
  0x1d   :  { %p424_p11 = scmp.ne.s32.totalorder %s25_s20, %s423_s1  ;;  %p429_p13 = scmp.lt.s32.totalorder %s423_s1, %s423_s1 }
  0x1f   :  { %p430_p0 = por %p429_p13, %p428_p12 }
  0x21   :  { %p431_p1 = pnand %p430_p0, %p424_p11 }
  0x23   :  { %434 = shalt.err (!%p431_p1)
}
  0x24   :  { %27 = dma.hbm_to_vmem [thread:$0]  %s645_s0, 128, %s25_s20, [#allocation3]  }
  0x25   :  { %s435_s12 = scalar_lea.hbm %s650_s5, 512 }
  0x26   :  { %p436_p2 = scmp.ne.s32.totalorder %s650_s5, %s435_s12  ;;  %p439_p3 = scmp.lt.u32.totalorder %s435_s12, %s650_s5 }
  0x28   :  { %p441_p4 = pnand %p439_p3, %p436_p2 }
  0x2a   :  { %444 = shalt.err (!%p441_p4)
}
  0x2b   :  { %s445_s19 = scalar_lea.vmem %s52_s22, 512  ;;  %p450_p6 = scmp.lt.s32.totalorder %s52_s22, %s52_s22 }
  0x2c   :  { %p446_p5 = scmp.ne.s32.totalorder %s52_s22, %s445_s19  ;;  %p451_p7 = scmp.lt.s32.totalorder %s445_s19, %s445_s19 }
  0x2e   :  { %p452_p8 = por %p451_p7, %p450_p6 }
  0x30   :  { %p453_p9 = pnand %p452_p8, %p446_p5 }
  0x32   :  { %456 = shalt.err (!%p453_p9)
}
  0x33   :  { %57 = dma.hbm_to_vmem [thread:$0]  %s650_s5, 512, %s52_s22, [#allocation6], %s510_s15, %s510_s15, %s511_s16  }
  0x34   :  { %501 = dma.done.wait [#allocation3], 128  }
  0x35   :  { %502 = vsyncadd [#allocation3], 4294967168 }
  0x36   :  { %503 = dma.done.wait [#allocation6], 1024  }
  0x37   :  { %504 = vsyncadd [#allocation6], 4294966272  ;;  %v514_v0 = vmov 0.0   ;;  %vm515_vm0 = vmmov 0   ;;  %v377_v1 = vld [vmem:[#allocation5] sm:$0xff]   ;;  %v378_v2 = vld [vmem:[#allocation5 + $0x8] sm:$0xff]  }
  0x38   :  { %344 = vmatprep.subr.bf16.mxu0 %v514_v0  ;;  %352 = vmatprep.mubr.msk.bf16.mxu0 %vm515_vm0, %v514_v0  ;;  %v379_v3 = vld [vmem:[#allocation5 + $0x10] sm:$0xff]   ;;  %v380_v4 = vld [vmem:[#allocation5 + $0x18] sm:$0xff]   ;;  %vm111_vm1 = vcmask 523264   ;;  %v381_v7 = vld [vmem:[#allocation7] sm:$0xff]  }
  0x39   :  { %356 = vmatprep.subr.bf16.mxu1 %v514_v0  ;;  %364 = vmatprep.mubr.msk.bf16.mxu1 %vm515_vm0, %v514_v0  ;;  %v70_v5 = vld [vmem:[#allocation2] sm:$0xff]  ;;  %v382_v8 = vld [vmem:[#allocation7 + $0x8] sm:$0xff]   ;;  %v383_v9 = vld [vmem:[#allocation7 + $0x10] sm:$0xff]  }
  0x3a   :  { %345 = vmatpush3.bf16.msra.mxu0 %v377_v1  ;;  %v71_v6 = vpack.c.bf16 %v70_v5, %v70_v5  ;;  %357 = vmatpush3.bf16.msra.mxu1 %v381_v7  ;;  %v384_v10 = vld [vmem:[#allocation7 + $0x18] sm:$0xff]  }
  0x3b   :  { %346 = vmatprep.subr.bf16.mxu0 %v514_v0  ;;  %358 = vmatprep.subr.bf16.mxu1 %v514_v0  ;;  %v319_v11 = vld [vmem:[%s647_s2] ss:$0 sm:$0xff] }
  0x3c   :  { %v325_v37 = vld [vmem:[%s648_s3] ss:$0 sm:$0xff]  ;;  %s516_s3 = smov [#allocation8]  }
  0x3d   :  { %v326_v39 = vld [vmem:[%s649_s4] ss:$0 sm:$0xff]  ;;  %s295_s4 = sshll.u32 %s516_s3, 4  ;;  %s296_s4 = int_to_ptr.vmem [resolvable:$true] %s295_s4 }
  0x3e   :  { %347 = vmatpush3.bf16.msra.mxu0 %v378_v2  ;;  %359 = vmatpush3.bf16.msra.mxu1 %v382_v8  ;;  %v328_v47 = vld [vmem:[%s651_s6] ss:$0 sm:$0xff]  ;;  %s457_s25 = scalar_lea.vmem %s296_s4, 128  ;;  %p462_p11 = scmp.lt.s32.totalorder %s296_s4, %s296_s4 }
  0x3f   :  { %348 = vmatprep.subr.bf16.mxu0 %v514_v0  ;;  %360 = vmatprep.subr.bf16.mxu1 %v514_v0  ;;  %p458_p10 = scmp.ne.s32.totalorder %s296_s4, %s457_s25  ;;  %p463_p12 = scmp.lt.s32.totalorder %s457_s25, %s457_s25 }
  0x41   :  { %p464_p13 = por %p463_p12, %p462_p11 }
  0x42   :  { %349 = vmatpush3.bf16.msra.mxu0 %v379_v3  ;;  %361 = vmatpush3.bf16.msra.mxu1 %v383_v9 }
  0x43   :  { %350 = vmatprep.subr.bf16.mxu0 %v514_v0  ;;  %362 = vmatprep.subr.bf16.mxu1 %v514_v0  ;;  %p465_p0 = pnand %p464_p13, %p458_p10 }
  0x46   :  { %351 = vmatpush3.bf16.msra.mxu0 %v380_v4  ;;  %363 = vmatpush3.bf16.msra.mxu1 %v384_v10 }
  0x49   :  { %353 = vmatmul.mubr.msk.bf16.vlgmr.msra.gmra.mrb[0].mxu0 %vm111_vm1, %v71_v6 }
 0x11c   :  { %v149_v12 = vpop.f32.mrb[0].mxu0 }
 0x11d   :  { %v150_v13 = vadd.f32 %v319_v11, %v149_v12  ;;  %v354_v14 = vpop.f32.mrb[1].mxu0 }
 0x11e   :  { %v152_v15 = vpop.f32.mrb[2].mxu0 }
 0x11f   :  { %v156_v16 = vsel %vm111_vm1, %v150_v13, 0.0  ;;  %155 = vst [vmem:[#allocation8] sm:$0xff] %v150_v13  ;;  %v355_v17 = vpop.f32.mrb[3].mxu0 }
 0x120   :  { %v157_v18 = vrot.slane %v156_v16, 4 }
 0x122   :  { %v158_v19 = vadd.f32 %v157_v18, %v156_v16 }
 0x124   :  { %v159_v20 = vrot.slane %v158_v19, 2 }
 0x126   :  { %v160_v21 = vadd.f32 %v159_v20, %v158_v19 }
 0x128   :  { %v161_v22 = vrot.slane %v160_v21, 1 }
 0x12a   :  { %v162_v23 = vadd.f32 %v161_v22, %v160_v21 }
 0x12c   :  { %v164_v24 = vmul.f32 0.125, %v162_v23 }
 0x12e   :  { %v165_v25 = vsub.f32 %v150_v13, %v164_v24 }
 0x130   :  { %v166_v26 = vmul.f32 %v165_v25, %v165_v25 }
 0x132   :  { %v167_v27 = vsel %vm111_vm1, %v166_v26, 0.0 }
 0x133   :  { %v168_v28 = vrot.slane %v167_v27, 4 }
 0x135   :  { %v169_v29 = vadd.f32 %v168_v28, %v167_v27 }
 0x137   :  { %v170_v30 = vrot.slane %v169_v29, 2 }
 0x139   :  { %v171_v31 = vadd.f32 %v170_v30, %v169_v29 }
 0x13b   :  { %v172_v32 = vrot.slane %v171_v31, 1 }
 0x13d   :  { %v173_v33 = vadd.f32 %v172_v32, %v171_v31 }
 0x13f   :  { %v174_v34 = vmul.f32 0.125, %v173_v33 }
 0x141   :  { %v175_v35 = vadd.f32 1e-05, %v174_v34 }
 0x143   :  { %385 = vrsqrt.f32 %v175_v35 }
 0x14d   :  { %v386_v36 = vpop.eup %385 }
 0x14e   :  { %v177_v38 = vmul.f32 %v386_v36, %v165_v25 }
 0x150   :  { %v185_v40 = vmul.f32 %v325_v37, %v177_v38 }
 0x152   :  { %v193_v41 = vadd.f32 %v326_v39, %v185_v40 }
 0x154   :  { %v195_v42 = vmul.f32 1.442695, %v193_v41  ;;  %vm194_vm2 = vcmp.gt.f32.partialorder %v193_v41, 0.0 }
 0x156   :  { %387 = vpow2.f32 %v195_v42 }
 0x160   :  { %v388_v43 = vpop.eup %387 }
 0x161   :  { %v327_v44 = vadd.f32 -1.0, %v388_v43 }
 0x163   :  { %v198_v45 = vsel %vm194_vm2, %v193_v41, %v327_v44 }
 0x164   :  { %v199_v46 = vpack.c.bf16 %v198_v45, %v198_v45 }
 0x166   :  { %365 = vmatmul.mubr.msk.bf16.vlgmr.msra.gmra.mrb[0].mxu1 %vm111_vm1, %v199_v46 }
 0x239   :  { %v276_v48 = vpop.f32.mrb[0].mxu1 }
 0x23a   :  { %v277_v49 = vadd.f32 %v328_v47, %v276_v48  ;;  %v366_v50 = vpop.f32.mrb[1].mxu1 }
 0x23b   :  { %v279_v51 = vpop.f32.mrb[2].mxu1 }
 0x23c   :  { %v367_v52 = vpop.f32.mrb[3].mxu1  ;;  %v282_v53 = vmul.f32 %v277_v49, %v277_v49 }
 0x23e   :  { %283 = vadd.xlane.f32.xlu0 %v282_v53 }
 0x23f   :  { %468 = shalt.err (!%p465_p0)
}
 0x240   :  { %s469_s6 = scalar_lea.hbm %s652_s7, 128 }
 0x241   :  { %p470_p1 = scmp.ne.s32.totalorder %s652_s7, %s469_s6  ;;  %p473_p2 = scmp.lt.u32.totalorder %s469_s6, %s652_s7 }
 0x243   :  { %p475_p3 = pnand %p473_p2, %p470_p1 }
 0x245   :  { %478 = shalt.err (!%p475_p3)
}
 0x246   :  { %298 = dma.vmem_to_hbm [thread:$0]  %s296_s4, 128, %s652_s7, [#allocation4]  }
 0x247   :  { %s517_s11 = smov [#allocation9]  }
 0x248   :  { %s305_s12 = sshll.u32 %s517_s11, 4  ;;  %s306_s12 = int_to_ptr.vmem [resolvable:$true] %s305_s12 }
 0x249   :  { %s479_s13 = scalar_lea.vmem %s306_s12, 128  ;;  %p484_p5 = scmp.lt.s32.totalorder %s306_s12, %s306_s12 }
 0x24a   :  { %p480_p4 = scmp.ne.s32.totalorder %s306_s12, %s479_s13  ;;  %p485_p6 = scmp.lt.s32.totalorder %s479_s13, %s479_s13 }
 0x24c   :  { %p486_p7 = por %p485_p6, %p484_p5 }
 0x24e   :  { %p487_p8 = pnand %p486_p7, %p480_p4 }
 0x2cb   :  { %v284_v54 = vpop.xlane.xlu0 %283 }
 0x2cc   :  { %v285_v55 = vmax.f32 %v284_v54, 1e-24 }
 0x2ce   :  { %389 = vrsqrt.f32 %v285_v55 }
 0x2d8   :  { %v390_v56 = vpop.eup %389 }
 0x2d9   :  { %v287_v57 = vmul.f32 %v390_v56, %v277_v49 }
 0x2db   :  { %288 = vst [vmem:[#allocation9] sm:$0xff] %v287_v57 }
 0x2dc   :  { %490 = shalt.err (!%p487_p8)
}
 0x2dd   :  { %s491_s7 = scalar_lea.hbm %s653_s8, 128 }
 0x2de   :  { %p492_p9 = scmp.ne.s32.totalorder %s653_s8, %s491_s7  ;;  %p495_p10 = scmp.lt.u32.totalorder %s491_s7, %s653_s8 }
 0x2e0   :  { %p497_p11 = pnand %p495_p10, %p492_p9 }
 0x2e2   :  { %500 = shalt.err (!%p497_p11)
}
 0x2e3   :  { %308 = dma.vmem_to_hbm [thread:$0]  %s306_s12, 128, %s653_s8, [#allocation10]  }
 0x2e4   :  { %505 = dma.done.wait [#allocation4], 128  }
 0x2e5   :  { %506 = vsyncadd [#allocation4], 4294967168 }
 0x2e6   :  { %507 = dma.done.wait [#allocation10], 128  }
 0x2e7   :  { %508 = vsyncadd [#allocation10], 4294967168 }
 0x2e8   :  { %315 = vsyncpa [#allocation3], 1 }
 0x2e9   :  { %316 = vsyncpa [#allocation6], 1 }
 0x2ea   :  { %317 = vsyncpa [#allocation4], 1 }
 0x2eb   :  { %318 = vsyncpa [#allocation10], 1 }

</bundles_post_ra>
